<compile_context>
chip_gen: v7x
topology: tpu7x:2x2x1
jax: 0.10.0
libtpu: 0.0.40
codegen_flags: <defaults>
</compile_context>

<pallas_src>
import numpy as np
import jax
import jax.numpy as jnp
from jax.experimental import pallas as pl
from jax.experimental.pallas import tpu as pltpu

EPS = 1e-5  # nn.InstanceNorm2d default (affine=False, biased variance)


def _make_kernel(R, HW, W):
    """R = samples_per_block * C sublane rows; HW = H*W lanes; W = image width."""
    INV_HW = 1.0 / HW
    deltas = tuple(dy * W + dx for dy in (-1, 0, 1) for dx in (-1, 0, 1))

    def instance_norm(y):
        # two-pass (centered) variance: numerically robust, same op count as one-pass
        mu = jnp.sum(y, axis=1, keepdims=True) * INV_HW           # (R, 1) XLU reduce
        yc = y - mu
        var = jnp.sum(yc * yc, axis=1, keepdims=True) * INV_HW
        return yc * jax.lax.rsqrt(var + EPS)                       # rsqrt -> EUP

    def kernel(x_ref, mask_ref, w1_ref, b1_ref, w2_ref, b2_ref, o_ref):
        X = x_ref[0]                                               # (R, HW) f32
        mask = mask_ref[...]                                       # (9R, HW) 0/1 f32

        def conv3x3(inp, w_ref, b_ref):
            # im2col: 9 shifted planes stacked along sublanes, boundary taps zeroed
            # by one full-width multiply, then one MXU dot does the whole
            # (tap, channel) contraction instead of 36 VPU broadcast-FMAs.
            planes = [inp if d == 0 else pltpu.roll(inp, (-d) % HW, axis=1)
                      for d in deltas]
            stack = jnp.concatenate(planes, axis=0) * mask          # (9R, HW)
            return jnp.dot(w_ref[...], stack,
                           preferred_element_type=jnp.float32) + b_ref[...]

        h = jnp.maximum(instance_norm(conv3x3(X, w1_ref, b1_ref)), 0.0)
        y = instance_norm(conv3x3(h, w2_ref, b2_ref))
        o_ref[0] = (X + y).astype(o_ref.dtype)                     # residual, aligned store

    return kernel


def _boundary_masks(H, W, R):
    """(9*R, H*W) 0/1 f32: per-tap 'same'-padding masks, repeated for every block row."""
    ys = np.arange(H).reshape(H, 1)
    xs = np.arange(W).reshape(1, W)
    taps = []
    for dy in (-1, 0, 1):
        for dx in (-1, 0, 1):
            m = np.ones((H, W), np.float32)
            if dx == 1:
                m = m * (xs < W - 1)
            elif dx == -1:
                m = m * (xs >= 1)
            if dy == 1:
                m = m * (ys < H - 1)
            elif dy == -1:
                m = m * (ys >= 1)
            taps.append(m.astype(np.float32).reshape(H * W))
    return np.repeat(np.stack(taps, axis=0), R, axis=0)            # (9R, HW)


@jax.jit
def residual_block(x, w1, b1, w2, b2):
    """x: (N, C, H, W) float32; w*: (C, C, 3, 3) OIHW; b*: (C,)."""
    N, C, H, W = x.shape
    HW = H * W

    # Fold samples into sublanes to fill (8,128) vregs, but keep >= 2 grid steps so
    # both TensorCores are used on v7x (N=2, C=4 here -> NB=1, grid=(2,)).
    NB = max(1, 8 // C)
    while NB > 1 and (N % NB != 0 or N // NB < 2):
        NB -= 1
    G = N // NB
    R = NB * C

    # Lane-dense layout plumbing (pure reshapes / trace-time einsum; no jnp.pad pass).
    x2 = x.reshape(G, R, HW)

    def stack_weight(w):
        # (C_out, C_in, 3, 3) -> (R, 9R): im2col-stacked, block-diagonal across the
        # NB folded samples (weights are shared across samples).
        wt = jnp.transpose(w, (0, 2, 3, 1)).reshape(C, 9, C)       # (co, tap, ci)
        eye = jnp.eye(NB, dtype=w.dtype)
        wbd = jnp.einsum("bB,otc->botBc", eye, wt)                 # (NB,co,9,NB,ci)
        return wbd.reshape(R, 9 * R)

    w1s, w2s = stack_weight(w1), stack_weight(w2)
    b1c = jnp.tile(b1, NB).reshape(R, 1)
    b2c = jnp.tile(b2, NB).reshape(R, 1)
    mask = jnp.asarray(_boundary_masks(H, W, R))                   # (9R, HW) constant

    kernel = _make_kernel(R, HW, W)

    # TODO(synk): when embedded in a full network, fuse adjacent residual blocks (or
    # more batch) into one pallas_call to amortize the ~0.35us/step pipeline overhead,
    # which dominates at this ~0.3 MFLOP problem size.
    out = pl.pallas_call(
        kernel,
        out_shape=jax.ShapeDtypeStruct((G, R, HW), jnp.float32),
        grid_spec=pltpu.PrefetchScalarGridSpec(
            num_scalar_prefetch=0,
            grid=(G,),
            in_specs=[
                pl.BlockSpec((1, R, HW), lambda n: (n, 0, 0)),     # x (per grid step)
                pl.BlockSpec((9 * R, HW), lambda n: (0, 0)),       # boundary masks
                pl.BlockSpec((R, 9 * R), lambda n: (0, 0)),        # w1 (resident, compact)
                pl.BlockSpec((R, 1), lambda n: (0, 0)),            # b1
                pl.BlockSpec((R, 9 * R), lambda n: (0, 0)),        # w2 (resident, compact)
                pl.BlockSpec((R, 1), lambda n: (0, 0)),            # b2
            ],
            out_specs=pl.BlockSpec((1, R, HW), lambda n: (n, 0, 0)),
        ),
        # grid steps are independent -> shard across TensorCores on v7x; neutral elsewhere
        compiler_params=pltpu.CompilerParams(dimension_semantics=("parallel",)),
    )(x2, mask, w1s, b1c, w2s, b2c)
    return out.reshape(N, C, H, W)


def _reference(x, w1, b1, w2, b2):
    # pure-JAX reference (XLA conv) for correctness checking
    def conv(h, w, b):
        y = jax.lax.conv_general_dilated(
            h, w, window_strides=(1, 1), padding=((1, 1), (1, 1)),
            dimension_numbers=("NCHW", "OIHW", "NCHW"))
        return y + b[None, :, None, None]

    def inorm(y):
        mu = jnp.mean(y, axis=(2, 3), keepdims=True)
        var = jnp.mean((y - mu) ** 2, axis=(2, 3), keepdims=True)
        return (y - mu) / jnp.sqrt(var + EPS)

    h = jnp.maximum(inorm(conv(x, w1, b1)), 0.0)
    return x + inorm(conv(h, w2, b2))


if __name__ == "__main__":
    N, C, H, W = 2, 4, 16, 16

    key = jax.random.PRNGKey(0)
    kx, k1, k2, k3, k4 = jax.random.split(key, 5)

    x = jax.random.normal(kx, (N, C, H, W), dtype=jnp.float32)
    # deterministic synthetic parameters (shapes follow nn.Conv2d(C, C, 3, padding=1))
    w1 = 0.3 * jax.random.normal(k1, (C, C, 3, 3), dtype=jnp.float32)
    b1 = 0.1 * jax.random.normal(k2, (C,), dtype=jnp.float32)
    w2 = 0.3 * jax.random.normal(k3, (C, C, 3, 3), dtype=jnp.float32)
    b2 = 0.1 * jax.random.normal(k4, (C,), dtype=jnp.float32)

    out = jax.block_until_ready(residual_block(x, w1, b1, w2, b2))
    ref = jax.block_until_ready(_reference(x, w1, b1, w2, b2))

    max_err = float(jnp.max(jnp.abs(out - ref)))
    assert out.shape == (N, C, H, W) and out.dtype == jnp.float32
    assert max_err < 1e-3, f"mismatch vs reference: max_err={max_err}"

    print("KERNEL_OK")
</pallas_src>

<mosaic_0001>
module attributes {stable_mosaic.version = 11 : i64} {
  func.func @kernel(%arg0: i32, %arg1: memref<1x4x256xf32, #tpu.memory_space<vmem>>, %arg2: memref<36x256xf32, #tpu.memory_space<vmem>>, %arg3: memref<4x36xf32, #tpu.memory_space<vmem>>, %arg4: memref<4x1xf32, #tpu.memory_space<vmem>>, %arg5: memref<4x36xf32, #tpu.memory_space<vmem>>, %arg6: memref<4x1xf32, #tpu.memory_space<vmem>>, %arg7: memref<1x4x256xf32, #tpu.memory_space<vmem>>) attributes {dimension_semantics = [#tpu.dimension_semantics<parallel>], iteration_bounds = array<i64: 2>, scalar_prefetch = 0 : i64, scratch_operands = 0 : i64, tpu.core_type = #tpu.core_type<tc>, window_params = [{transform_indices = @transform_0, window_bounds = array<i64: 1, 4, 256>}, {pipeline_mode = #tpu.pipeline_mode<synchronous>, transform_indices = @transform_1, window_bounds = array<i64: 36, 256>}, {pipeline_mode = #tpu.pipeline_mode<synchronous>, transform_indices = @transform_2, window_bounds = array<i64: 4, 36>}, {pipeline_mode = #tpu.pipeline_mode<synchronous>, transform_indices = @transform_3, window_bounds = array<i64: 4, 1>}, {pipeline_mode = #tpu.pipeline_mode<synchronous>, transform_indices = @transform_4, window_bounds = array<i64: 4, 36>}, {pipeline_mode = #tpu.pipeline_mode<synchronous>, transform_indices = @transform_5, window_bounds = array<i64: 4, 1>}, {transform_indices = @transform_6, window_bounds = array<i64: 1, 4, 256>}]} {
    %c0 = arith.constant 0 : index
    %c0_0 = arith.constant 0 : index
    %c0_1 = arith.constant 0 : index
    %0 = vector.load %arg1[%c0, %c0_0, %c0_1] : memref<1x4x256xf32, #tpu.memory_space<vmem>>, vector<1x4x256xf32>
    %1 = vector.shape_cast %0 : vector<1x4x256xf32> to vector<4x256xf32>
    %c0_2 = arith.constant 0 : index
    %c0_3 = arith.constant 0 : index
    %2 = vector.load %arg2[%c0_2, %c0_3] : memref<36x256xf32, #tpu.memory_space<vmem>>, vector<36x256xf32>
    %c17_i32 = arith.constant 17 : i32
    %3 = tpu.dynamic_rotate %1 by %c17_i32 dim 1 : vector<4x256xf32>, i32 -> vector<4x256xf32>
    %c16_i32 = arith.constant 16 : i32
    %4 = tpu.dynamic_rotate %1 by %c16_i32 dim 1 : vector<4x256xf32>, i32 -> vector<4x256xf32>
    %c15_i32 = arith.constant 15 : i32
    %5 = tpu.dynamic_rotate %1 by %c15_i32 dim 1 : vector<4x256xf32>, i32 -> vector<4x256xf32>
    %c1_i32 = arith.constant 1 : i32
    %6 = tpu.dynamic_rotate %1 by %c1_i32 dim 1 : vector<4x256xf32>, i32 -> vector<4x256xf32>
    %c255_i32 = arith.constant 255 : i32
    %7 = tpu.dynamic_rotate %1 by %c255_i32 dim 1 : vector<4x256xf32>, i32 -> vector<4x256xf32>
    %c241_i32 = arith.constant 241 : i32
    %8 = tpu.dynamic_rotate %1 by %c241_i32 dim 1 : vector<4x256xf32>, i32 -> vector<4x256xf32>
    %c240_i32 = arith.constant 240 : i32
    %9 = tpu.dynamic_rotate %1 by %c240_i32 dim 1 : vector<4x256xf32>, i32 -> vector<4x256xf32>
    %c239_i32 = arith.constant 239 : i32
    %10 = tpu.dynamic_rotate %1 by %c239_i32 dim 1 : vector<4x256xf32>, i32 -> vector<4x256xf32>
    %11 = tpu.concatenate %3, %4, %5, %6, %1, %7, %8, %9, %10 in 0 : vector<4x256xf32>, vector<4x256xf32>, vector<4x256xf32>, vector<4x256xf32>, vector<4x256xf32>, vector<4x256xf32>, vector<4x256xf32>, vector<4x256xf32>, vector<4x256xf32> -> vector<36x256xf32>
    %12 = arith.mulf %11, %2 : vector<36x256xf32>
    %c0_4 = arith.constant 0 : index
    %c0_5 = arith.constant 0 : index
    %13 = vector.load %arg3[%c0_4, %c0_5] : memref<4x36xf32, #tpu.memory_space<vmem>>, vector<4x36xf32>
    %cst = arith.constant dense<0.000000e+00> : vector<4x256xf32>
    %14 = tpu.matmul %13, %12, %cst {dimension_numbers = #tpu.dot_dimension_numbers<[1], [0], [0], [1], [0, 0, 1, 1], [], []>} : vector<4x36xf32>, vector<36x256xf32>, vector<4x256xf32> -> vector<4x256xf32>
    %c0_6 = arith.constant 0 : index
    %c0_7 = arith.constant 0 : index
    %15 = vector.load %arg4[%c0_6, %c0_7] : memref<4x1xf32, #tpu.memory_space<vmem>>, vector<4x1xf32>
    %16 = vector.broadcast %15 : vector<4x1xf32> to vector<4x256xf32>
    %17 = arith.addf %14, %16 : vector<4x256xf32>
    %cst_8 = arith.constant dense<0.000000e+00> : vector<4xf32>
    %18 = vector.multi_reduction <add>, %17, %cst_8 [1] : vector<4x256xf32> to vector<4xf32>
    %19 = vector.shape_cast %18 : vector<4xf32> to vector<4x1xf32>
    %cst_9 = arith.constant 3.906250e-03 : f32
    %20 = vector.broadcast %cst_9 : f32 to vector<4x1xf32>
    %21 = arith.mulf %19, %20 : vector<4x1xf32>
    %22 = vector.broadcast %21 : vector<4x1xf32> to vector<4x256xf32>
    %23 = arith.subf %17, %22 : vector<4x256xf32>
    %24 = arith.mulf %23, %23 : vector<4x256xf32>
    %cst_10 = arith.constant dense<0.000000e+00> : vector<4xf32>
    %25 = vector.multi_reduction <add>, %24, %cst_10 [1] : vector<4x256xf32> to vector<4xf32>
    %26 = vector.shape_cast %25 : vector<4xf32> to vector<4x1xf32>
    %cst_11 = arith.constant 3.906250e-03 : f32
    %27 = vector.broadcast %cst_11 : f32 to vector<4x1xf32>
    %28 = arith.mulf %26, %27 : vector<4x1xf32>
    %cst_12 = arith.constant 9.99999974E-6 : f32
    %29 = vector.broadcast %cst_12 : f32 to vector<4x1xf32>
    %30 = arith.addf %28, %29 : vector<4x1xf32>
    %31 = math.rsqrt %30 : vector<4x1xf32>
    %32 = vector.broadcast %31 : vector<4x1xf32> to vector<4x256xf32>
    %33 = arith.mulf %23, %32 : vector<4x256xf32>
    %cst_13 = arith.constant 0.000000e+00 : f32
    %34 = vector.broadcast %cst_13 : f32 to vector<4x256xf32>
    %35 = arith.maximumf %33, %34 : vector<4x256xf32>
    %c17_i32_14 = arith.constant 17 : i32
    %36 = tpu.dynamic_rotate %35 by %c17_i32_14 dim 1 : vector<4x256xf32>, i32 -> vector<4x256xf32>
    %c16_i32_15 = arith.constant 16 : i32
    %37 = tpu.dynamic_rotate %35 by %c16_i32_15 dim 1 : vector<4x256xf32>, i32 -> vector<4x256xf32>
    %c15_i32_16 = arith.constant 15 : i32
    %38 = tpu.dynamic_rotate %35 by %c15_i32_16 dim 1 : vector<4x256xf32>, i32 -> vector<4x256xf32>
    %c1_i32_17 = arith.constant 1 : i32
    %39 = tpu.dynamic_rotate %35 by %c1_i32_17 dim 1 : vector<4x256xf32>, i32 -> vector<4x256xf32>
    %c255_i32_18 = arith.constant 255 : i32
    %40 = tpu.dynamic_rotate %35 by %c255_i32_18 dim 1 : vector<4x256xf32>, i32 -> vector<4x256xf32>
    %c241_i32_19 = arith.constant 241 : i32
    %41 = tpu.dynamic_rotate %35 by %c241_i32_19 dim 1 : vector<4x256xf32>, i32 -> vector<4x256xf32>
    %c240_i32_20 = arith.constant 240 : i32
    %42 = tpu.dynamic_rotate %35 by %c240_i32_20 dim 1 : vector<4x256xf32>, i32 -> vector<4x256xf32>
    %c239_i32_21 = arith.constant 239 : i32
    %43 = tpu.dynamic_rotate %35 by %c239_i32_21 dim 1 : vector<4x256xf32>, i32 -> vector<4x256xf32>
    %44 = tpu.concatenate %36, %37, %38, %39, %35, %40, %41, %42, %43 in 0 : vector<4x256xf32>, vector<4x256xf32>, vector<4x256xf32>, vector<4x256xf32>, vector<4x256xf32>, vector<4x256xf32>, vector<4x256xf32>, vector<4x256xf32>, vector<4x256xf32> -> vector<36x256xf32>
    %45 = arith.mulf %44, %2 : vector<36x256xf32>
    %c0_22 = arith.constant 0 : index
    %c0_23 = arith.constant 0 : index
    %46 = vector.load %arg5[%c0_22, %c0_23] : memref<4x36xf32, #tpu.memory_space<vmem>>, vector<4x36xf32>
    %cst_24 = arith.constant dense<0.000000e+00> : vector<4x256xf32>
    %47 = tpu.matmul %46, %45, %cst_24 {dimension_numbers = #tpu.dot_dimension_numbers<[1], [0], [0], [1], [0, 0, 1, 1], [], []>} : vector<4x36xf32>, vector<36x256xf32>, vector<4x256xf32> -> vector<4x256xf32>
    %c0_25 = arith.constant 0 : index
    %c0_26 = arith.constant 0 : index
    %48 = vector.load %arg6[%c0_25, %c0_26] : memref<4x1xf32, #tpu.memory_space<vmem>>, vector<4x1xf32>
    %49 = vector.broadcast %48 : vector<4x1xf32> to vector<4x256xf32>
    %50 = arith.addf %47, %49 : vector<4x256xf32>
    %cst_27 = arith.constant dense<0.000000e+00> : vector<4xf32>
    %51 = vector.multi_reduction <add>, %50, %cst_27 [1] : vector<4x256xf32> to vector<4xf32>
    %52 = vector.shape_cast %51 : vector<4xf32> to vector<4x1xf32>
    %cst_28 = arith.constant 3.906250e-03 : f32
    %53 = vector.broadcast %cst_28 : f32 to vector<4x1xf32>
    %54 = arith.mulf %52, %53 : vector<4x1xf32>
    %55 = vector.broadcast %54 : vector<4x1xf32> to vector<4x256xf32>
    %56 = arith.subf %50, %55 : vector<4x256xf32>
    %57 = arith.mulf %56, %56 : vector<4x256xf32>
    %cst_29 = arith.constant dense<0.000000e+00> : vector<4xf32>
    %58 = vector.multi_reduction <add>, %57, %cst_29 [1] : vector<4x256xf32> to vector<4xf32>
    %59 = vector.shape_cast %58 : vector<4xf32> to vector<4x1xf32>
    %cst_30 = arith.constant 3.906250e-03 : f32
    %60 = vector.broadcast %cst_30 : f32 to vector<4x1xf32>
    %61 = arith.mulf %59, %60 : vector<4x1xf32>
    %cst_31 = arith.constant 9.99999974E-6 : f32
    %62 = vector.broadcast %cst_31 : f32 to vector<4x1xf32>
    %63 = arith.addf %61, %62 : vector<4x1xf32>
    %64 = math.rsqrt %63 : vector<4x1xf32>
    %65 = vector.broadcast %64 : vector<4x1xf32> to vector<4x256xf32>
    %66 = arith.mulf %56, %65 : vector<4x256xf32>
    %67 = arith.addf %1, %66 : vector<4x256xf32>
    %c0_32 = arith.constant 0 : index
    %c0_33 = arith.constant 0 : index
    %c0_34 = arith.constant 0 : index
    %68 = vector.load %arg7[%c0_32, %c0_33, %c0_34] : memref<1x4x256xf32, #tpu.memory_space<vmem>>, vector<1x4x256xf32>
    %69 = vector.shape_cast %68 : vector<1x4x256xf32> to vector<4x256xf32>
    %70 = vector.shape_cast %67 : vector<4x256xf32> to vector<1x4x256xf32>
    tpu.vector_store %arg7[%c0_32, %c0_33, %c0_34], %70 {strides = array<i32>} : memref<1x4x256xf32, #tpu.memory_space<vmem>>, vector<1x4x256xf32>,
    return
  }
  func.func @transform_0(%arg0: i32) -> (i32, i32, i32) {
    %c0_i32 = arith.constant 0 : i32
    %c0_i32_0 = arith.constant 0 : i32
    %c0_i32_1 = arith.constant 0 : i32
    return %arg0, %c0_i32, %c0_i32_0 : i32, i32, i32
  }
  func.func @transform_1(%arg0: i32) -> (i32, i32) {
    %c0_i32 = arith.constant 0 : i32
    %c0_i32_0 = arith.constant 0 : i32
    %c0_i32_1 = arith.constant 0 : i32
    return %c0_i32, %c0_i32_0 : i32, i32
  }
  func.func @transform_2(%arg0: i32) -> (i32, i32) {
    %c0_i32 = arith.constant 0 : i32
    %c0_i32_0 = arith.constant 0 : i32
    %c0_i32_1 = arith.constant 0 : i32
    return %c0_i32, %c0_i32_0 : i32, i32
  }
  func.func @transform_3(%arg0: i32) -> (i32, i32) {
    %c0_i32 = arith.constant 0 : i32
    %c0_i32_0 = arith.constant 0 : i32
    %c0_i32_1 = arith.constant 0 : i32
    return %c0_i32, %c0_i32_0 : i32, i32
  }
  func.func @transform_4(%arg0: i32) -> (i32, i32) {
    %c0_i32 = arith.constant 0 : i32
    %c0_i32_0 = arith.constant 0 : i32
    %c0_i32_1 = arith.constant 0 : i32
    return %c0_i32, %c0_i32_0 : i32, i32
  }
  func.func @transform_5(%arg0: i32) -> (i32, i32) {
    %c0_i32 = arith.constant 0 : i32
    %c0_i32_0 = arith.constant 0 : i32
    %c0_i32_1 = arith.constant 0 : i32
    return %c0_i32, %c0_i32_0 : i32, i32
  }
  func.func @transform_6(%arg0: i32) -> (i32, i32, i32) {
    %c0_i32 = arith.constant 0 : i32
    %c0_i32_0 = arith.constant 0 : i32
    %c0_i32_1 = arith.constant 0 : i32
    return %arg0, %c0_i32, %c0_i32_0 : i32, i32, i32
  }
}

</mosaic_0001>

<bundles_post_ra>
// kernel: residual_block.1
= control target key start
LH: loop header
LB: loop body
LE: loop exit
PB: predicated region body
PF: predicated region fallthrough
CT: control target
= control target key end

     0   :  { %s847_s21 = smov 0   ;;  %s1136_s0 = inlined_call_operand.vmem [shape: f32[2,4,256], index: 0, kind: input, shape index: {}]   ;;  %s1137_s1 = inlined_call_operand.vmem [shape: f32[36,256], index: 1, kind: input, shape index: {}]   ;;  %s1138_s2 = inlined_call_operand.vmem [shape: f32[4,36], index: 2, kind: input, shape index: {}]   ;;  %s1139_s3 = inlined_call_operand.vmem [shape: f32[4,1], index: 3, kind: input, shape index: {}]   ;;  %s1140_s4 = inlined_call_operand.vmem [shape: f32[4,36], index: 4, kind: input, shape index: {}]   ;;  %s1141_s5 = inlined_call_operand.vmem [shape: f32[4,1], index: 5, kind: input, shape index: {}]   ;;  %s1142_s6 = inlined_call_operand.vmem [shape: f32[2,4,256], index: 6, kind: output, shape index: {}]  }
   0x1 LB: > { %s735_s22 = sadd.s32 4294967295, %s800_s21   ;;  %p739_p0 = scmp.ge.s32.totalorder %s800_s21, 1  ;;  %s800_s21 = sphi %s847_s21, %s16_s21  }
   0x2   : > { %p212_p1 = scmp.lt.s32.totalorder %s800_s21, 3 }
   0x4   : > { %p213_p2 = pnand %p739_p0, %p212_p1 }
   0x5   : > { %p242_p3 = scmp.lt.s32.totalorder (!%p213_p2), %s735_s22, 1  ;;  %s802_s27 = smov (!%p213_p2), 1   ;;  %v808_v2 = vmov (!%p213_p2), 0.0   ;;  %v810_v3 = vmov (!%p213_p2), 0   ;;  %v368_v4 = vld [vmem:[%s1139_s3] sm:$0xf] (!%p213_p2)  ;;  %v270_v5 = vlaneseq (!%p213_p2) }
   0x6   : > { %216 = sbr.rel (%p213_p2) target bundleno = 1386 (0x56a), region = 44  ;;  %s803_s28 = smov (!%p213_p2), 16   ;;  %448 = vmatprep.mubr.f32.mxu0 (!%p213_p2), %v808_v2  ;;  %647 = vmatprep.mubr.f32.mxu1 (!%p213_p2), %v808_v2  ;;  %vm348_vm3 = vcmask (!%p213_p2), 1043456   ;;  %v925_v21 = vld [vmem:[%s1137_s1 + $0x8] sm:$0xff] (!%p213_p2)  ;;  %v930_v26 = vld [vmem:[%s1137_s1 + $0x18] sm:$0xff] (!%p213_p2)  ;;  %v936_v28 = vld [vmem:[%s1137_s1] sm:$0xff] (!%p213_p2) }
   0x7   : > { %s804_s29 = smov (!%p213_p2), 17   ;;  %s805_s30 = smov (!%p213_p2), 15   ;;  %788 = vset.pattern.permute.xlu0 (!%p213_p2), %v810_v3  ;;  %v904_v8 = vand.u32 (!%p213_p2), 127, %v270_v5  ;;  %v941_v29 = vld [vmem:[%s1137_s1 + $0x10] sm:$0xff] (!%p213_p2)  ;;  %v968_v51 = vld [vmem:[%s1137_s1 + $0x28] sm:$0xff] (!%p213_p2)  ;;  %v982_v58 = vld [vmem:[%s1137_s1 + $0x38] sm:$0xff] (!%p213_p2) }
   0x8   : > { %s806_s7 = smov (!%p213_p2), 127   ;;  %s807_s8 = smov (!%p213_p2), 112   ;;  %v977_v57 = vld [vmem:[%s1137_s1 + $0x30] sm:$0xff] (!%p213_p2)  ;;  %v987_v60 = vld [vmem:[%s1137_s1 + $0x20] sm:$0xff] (!%p213_p2)  ;;  %v1002_v5 = vld [vmem:[%s1137_s1 + $0x48] sm:$0xf] (!%p213_p2) }
   0x9   : > { %s809_s9 = smov (!%p213_p2), 113   ;;  %s811_s10 = smov (!%p213_p2), 111   ;;  %vm293_vm0 = vcmp.lt.s32.totalorder (!%p213_p2), %v904_v8, 1  ;;  %vm279_vm1 = vcmp.lt.s32.totalorder (!%p213_p2), %v904_v8, 16  ;;  %vm272_vm2 = vcmp.lt.s32.totalorder (!%p213_p2), %v904_v8, 17  ;;  %vm286_vm4 = vcmp.lt.s32.totalorder (!%p213_p2), %v904_v8, 15 }
   0xa   : > { %vm300_vm5 = vcmp.lt.s32.totalorder (!%p213_p2), %v904_v8, 127  ;;  %vm314_vm6 = vcmp.lt.s32.totalorder (!%p213_p2), %v904_v8, 112  ;;  %vm307_vm7 = vcmp.lt.s32.totalorder (!%p213_p2), %v904_v8, 113  ;;  %vm321_vm8 = vcmp.lt.s32.totalorder (!%p213_p2), %v904_v8, 111 }
   0xb   : > { %vm374_vm9 = vcmask (!%p213_p2), 293888  }
   0xd   : > { %s1144_s22 = smov (!%p242_p3, %s735_s22), 1 }
   0xe   : > { %s752_s23 = sshll.u32 %s1144_s22, 3 }
   0xf   : > { %s246_s26 = scalar_lea.vmem %s1136_s0, %s752_s23 }
  0x10   : > { %v863_v0 = vld [vmem:[%s246_s26] sm:$0xff] }
  0x11   : > { %289 = vrot.lane.b32.xlu1 %v863_v0, %s802_s27  ;;  %275 = vrot.lane.b32.xlu0 %v863_v0, %s803_s28  ;;  %v871_v1 = vcombine.high %v863_v0, %v863_v0 }
  0x15   : > { %266 = vrot.lane.b32.xlu0 %v863_v0, %s804_s29  ;;  %291 = vrot.lane.b32.xlu1 %v871_v1, %s802_s27 }
  0x19   : > { %268 = vrot.lane.b32.xlu1 %v871_v1, %s804_s29  ;;  %277 = vrot.lane.b32.xlu0 %v871_v1, %s803_s28 }
  0x1d   : > { %284 = vrot.lane.b32.xlu1 %v871_v1, %s805_s30  ;;  %282 = vrot.lane.b32.xlu0 %v863_v0, %s805_s30 }
  0x21   : > { %298 = vrot.lane.b32.xlu1 %v871_v1, %s806_s7  ;;  %296 = vrot.lane.b32.xlu0 %v863_v0, %s806_s7 }
  0x25   : > { %312 = vrot.lane.b32.xlu1 %v871_v1, %s807_s8  ;;  %310 = vrot.lane.b32.xlu0 %v863_v0, %s807_s8 }
  0x29   : > { %305 = vrot.lane.b32.xlu1 %v871_v1, %s809_s9  ;;  %303 = vrot.lane.b32.xlu0 %v863_v0, %s809_s9 }
  0x2d   : > { %319 = vrot.lane.b32.xlu1 %v871_v1, %s811_s10  ;;  %317 = vrot.lane.b32.xlu0 %v863_v0, %s811_s10 }
  0x31   : > { %371 = vperm.xlu0 %788, %v368_v4  }
  0x83   : > { %v290_v6 = vpop.permute.xlu1 %289  ;;  %v276_v7 = vpop.permute.xlu0 %275 }
  0x87   : > { %v267_v9 = vpop.permute.xlu0 %266  ;;  %v292_v10 = vpop.permute.xlu1 %291 }
  0x88   : > { %v294_v13 = vsel %vm293_vm0, %v290_v6, %v292_v10  ;;  %v295_v14 = vsel %vm293_vm0, %v292_v10, %v290_v6 }
  0x89   : > { %v332_v22 = vrot.slane %v295_v14, 4  ;;  %v333_v23 = vrot.slane %v294_v13, 4 }
  0x8b   : > { %v269_v11 = vpop.permute.xlu1 %268  ;;  %v278_v12 = vpop.permute.xlu0 %277 }
  0x8c   : > { %v280_v15 = vsel %vm279_vm1, %v276_v7, %v278_v12  ;;  %v281_v16 = vsel %vm279_vm1, %v278_v12, %v276_v7  ;;  %v273_v19 = vsel %vm272_vm2, %v267_v9, %v269_v11  ;;  %v274_v20 = vsel %vm272_vm2, %v269_v11, %v267_v9  ;;  %v1008_v11 = vld [vmem:[%s1137_s1 + $0x40] sm:$0xf] }
  0x8d   : > { %v326_v17 = vrot.slane %v281_v16, 4  ;;  %v327_v18 = vrot.slane %v280_v15, 4 }
  0x8f   : > { %v285_v24 = vpop.permute.xlu1 %284  ;;  %v283_v25 = vpop.permute.xlu0 %282  ;;  %v350_v27 = vsel %vm348_vm3, %v273_v19, %v327_v18  ;;  %v349_v30 = vsel %vm348_vm3, %v274_v20, %v326_v17  ;;  %v367_v17 = vld [vmem:[%s1138_s2] sm:$0xf] }
  0x90   : > { %v287_v31 = vsel %vm286_vm4, %v283_v25, %v285_v24  ;;  %v288_v32 = vsel %vm286_vm4, %v285_v24, %v283_v25  ;;  %v358_v35 = vmul.f32 %v350_v27, %v925_v21  ;;  %v357_v37 = vmul.f32 %v349_v30, %v936_v28 }
  0x91   : > { %v351_v33 = vsel %vm348_vm3, %v288_v32, %v332_v22  ;;  %v352_v34 = vsel %vm348_vm3, %v287_v31, %v333_v23 }
  0x92   : > { %v360_v36 = vmul.f32 %v352_v34, %v930_v26  ;;  %v359_v38 = vmul.f32 %v351_v33, %v941_v29 }
  0x93   : > { %v299_v39 = vpop.permute.xlu1 %298  ;;  %v297_v40 = vpop.permute.xlu0 %296 }
  0x94   : > { %v301_v41 = vsel %vm300_vm5, %v297_v40, %v299_v39  ;;  %v302_v42 = vsel %vm300_vm5, %v299_v39, %v297_v40  ;;  %v754_v43 = vpack.c.bf16 %v360_v36, %v358_v35  ;;  %v756_v44 = vpack.c.bf16 %v359_v38, %v357_v37 }
  0x95   : > { %v338_v45 = vrot.slane %v301_v41, 4  ;;  %v339_v46 = vrot.slane %v302_v42, 4 }
  0x96   : > { %755 = vmatprep.subr.bf16.mxu0 %v754_v43 }
  0x97   : > { %v313_v47 = vpop.permute.xlu1 %312  ;;  %757 = vmatpush1.bf16.msra.mxu0 %v756_v44  ;;  %v311_v48 = vpop.permute.xlu0 %310  ;;  %v353_v52 = vsel %vm348_vm3, %v863_v0, %v338_v45  ;;  %v354_v53 = vsel %vm348_vm3, %v871_v1, %v339_v46 }
  0x98   : > { %v315_v49 = vsel %vm314_vm6, %v311_v48, %v313_v47  ;;  %v316_v50 = vsel %vm314_vm6, %v313_v47, %v311_v48  ;;  %v362_v4 = vmul.f32 %v354_v53, %v968_v51  ;;  %v361_v6 = vmul.f32 %v353_v52, %v987_v60  ;;  %v568_v47 = vld [vmem:[%s1141_s5] sm:$0xf] }
  0x99   : > { %v344_v54 = vrot.slane %v315_v49, 4  ;;  %v345_v55 = vrot.slane %v316_v50, 4 }
  0x9b   : > { %v306_v56 = vpop.permute.xlu1 %305  ;;  %v304_v59 = vpop.permute.xlu0 %303 }
  0x9c   : > { %v308_v61 = vsel %vm307_vm7, %v304_v59, %v306_v56  ;;  %v309_v62 = vsel %vm307_vm7, %v306_v56, %v304_v59 }
  0x9d   : > { %v355_v63 = vsel %vm348_vm3, %v308_v61, %v344_v54  ;;  %v356_v1 = vsel %vm348_vm3, %v309_v62, %v345_v55 }
  0x9e   : > { %v363_v2 = vmul.f32 %v355_v63, %v977_v57  ;;  %v364_v3 = vmul.f32 %v356_v1, %v982_v58 }
  0x9f   : > { %v320_v7 = vpop.permute.xlu1 %319  ;;  %v318_v9 = vpop.permute.xlu0 %317 }
  0xa0   : > { %v758_v10 = vpack.c.bf16 %v364_v3, %v362_v4  ;;  %v322_v12 = vsel %vm321_vm8, %v318_v9, %v320_v7  ;;  %v323_v13 = vsel %vm321_vm8, %v320_v7, %v318_v9  ;;  %v760_v14 = vpack.c.bf16 %v363_v2, %v361_v6 }
  0xa1   : > { %v366_v15 = vmul.f32 %v323_v13, %v1002_v5  ;;  %v365_v16 = vmul.f32 %v322_v12, %v1008_v11 }
  0xa2   : > { %759 = vmatprep.subr.bf16.mxu0 %v758_v10 }
  0xa3   : > { %761 = vmatpush1.bf16.msra.mxu0 %v760_v14 }
  0xa4   : > { %744 = vmatprep.subr.msk.mxu0 %vm348_vm3, %v366_v15 }
  0xa7   : > { %745 = vmatpush1.msk.msra.mxu0 %vm348_vm3, %v365_v16 }
  0xa8   : > { %746 = vmatmul.mubr.msk.f32.vlgmr.msra.gmra.mrb[0].mxu0 %vm374_vm9, %v367_v17 }
  0xb0   : > { %v372_v18 = vpop.permute.xlu0 %371 }
 0x17b   : > { %v450_v19 = vpop.f32.mrb[0].mxu0 }
 0x17c   : > { %v451_v20 = vadd.f32 %v450_v19, %v372_v18  ;;  %v452_v22 = vpop.f32.mrb[1].mxu0 }
 0x17d   : > { %v453_v23 = vadd.f32 %v452_v22, %v372_v18 }
 0x17e   : > { %v455_v24 = vsel %vm348_vm3, %v451_v20, 0.0 }
 0x17f   : > { %v456_v25 = vsel %vm348_vm3, %v453_v23, 0.0 }
 0x180   : > { %v457_v27 = vadd.f32 %v456_v25, %v455_v24 }
 0x182   : > { %458 = vadd.xlane.f32.xlu1 %v457_v27 }
 0x20f   : > { %v459_v30 = vpop.xlane.xlu1 %458 }
 0x210   : > { %v460_v31 = vmul.f32 0.00390625, %v459_v30 }
 0x212   : > { %v461_v32 = vsub.f32 %v451_v20, %v460_v31  ;;  %v462_v33 = vsub.f32 %v453_v23, %v460_v31 }
 0x214   : > { %v463_v34 = vmul.f32 %v461_v32, %v461_v32  ;;  %v464_v35 = vmul.f32 %v462_v33, %v462_v33 }
 0x216   : > { %v465_v36 = vsel %vm348_vm3, %v463_v34, 0.0  ;;  %v466_v37 = vsel %vm348_vm3, %v464_v35, 0.0 }
 0x217   : > { %v467_v38 = vadd.f32 %v466_v37, %v465_v36 }
 0x219   : > { %468 = vadd.xlane.f32.xlu0 %v467_v38 }
 0x2a6   : > { %v469_v39 = vpop.xlane.xlu0 %468 }
 0x2a7   : > { %v470_v40 = vmul.f32 0.00390625, %v469_v39 }
 0x2a9   : > { %v471_v41 = vadd.f32 1e-05, %v470_v40 }
 0x2ab   : > { %790 = vrsqrt.f32 %v471_v41 }
 0x2b5   : > { %v791_v42 = vpop.eup %790 }
 0x2b6   : > { %v473_v43 = vmul.f32 %v791_v42, %v461_v32  ;;  %v474_v44 = vmul.f32 %v791_v42, %v462_v33 }
 0x2b8   : > { %v1026_v45 = vmax.f32 %v473_v43, 0.0  ;;  %v1028_v46 = vmax.f32 %v474_v44, 0.0 }
 0x2ba   : > { %485 = vrot.lane.b32.xlu0 %v1028_v46, %s803_s28  ;;  %483 = vrot.lane.b32.xlu1 %v1026_v45, %s803_s28 }
 0x2be   : > { %477 = vrot.lane.b32.xlu0 %v1026_v45, %s804_s29  ;;  %495 = vrot.lane.b32.xlu1 %v1026_v45, %s802_s27 }
 0x2c2   : > { %489 = vrot.lane.b32.xlu0 %v1026_v45, %s805_s30  ;;  %497 = vrot.lane.b32.xlu1 %v1028_v46, %s802_s27 }
 0x2c6   : > { %501 = vrot.lane.b32.xlu0 %v1026_v45, %s806_s7  ;;  %479 = vrot.lane.b32.xlu1 %v1028_v46, %s804_s29 }
 0x2ca   : > { %513 = vrot.lane.b32.xlu0 %v1026_v45, %s807_s8  ;;  %491 = vrot.lane.b32.xlu1 %v1028_v46, %s805_s30 }
 0x2ce   : > { %507 = vrot.lane.b32.xlu0 %v1026_v45, %s809_s9  ;;  %503 = vrot.lane.b32.xlu1 %v1028_v46, %s806_s7 }
 0x2d2   : > { %519 = vrot.lane.b32.xlu0 %v1026_v45, %s811_s10  ;;  %515 = vrot.lane.b32.xlu1 %v1028_v46, %s807_s8 }
 0x2d6   : > { %571 = vperm.xlu0 %788, %v568_v47   ;;  %509 = vrot.lane.b32.xlu1 %v1028_v46, %s809_s9  ;;  %s251_s9 = scalar_lea.vmem %s1142_s6, %s752_s23 }
 0x2da   : > { %521 = vrot.lane.b32.xlu1 %v1028_v46, %s811_s10 }
 0x32c   : > { %v486_v48 = vpop.permute.xlu0 %485  ;;  %v484_v49 = vpop.permute.xlu1 %483 }
 0x32d   : > { %v487_v55 = vsel %vm279_vm1, %v484_v49, %v486_v48  ;;  %v488_v56 = vsel %vm279_vm1, %v486_v48, %v484_v49 }
 0x32e   : > { %v527_v2 = vrot.slane %v488_v56, 4  ;;  %v528_v3 = vrot.slane %v487_v55, 4 }
 0x330   : > { %v478_v50 = vpop.permute.xlu0 %477  ;;  %v496_v52 = vpop.permute.xlu1 %495 }
 0x334   : > { %v490_v53 = vpop.permute.xlu0 %489  ;;  %v498_v54 = vpop.permute.xlu1 %497 }
 0x335   : > { %v499_v61 = vsel %vm293_vm0, %v496_v52, %v498_v54  ;;  %v500_v62 = vsel %vm293_vm0, %v498_v54, %v496_v52 }
 0x336   : > { %v533_v6 = vrot.slane %v500_v62, 4  ;;  %v534_v7 = vrot.slane %v499_v61, 4 }
 0x338   : > { %v480_v59 = vpop.permute.xlu1 %479  ;;  %v502_v4 = vpop.permute.xlu0 %501 }
 0x339   : > { %v481_v63 = vsel %vm272_vm2, %v478_v50, %v480_v59  ;;  %v482_v1 = vsel %vm272_vm2, %v480_v59, %v478_v50 }
 0x33a   : > { %v549_v9 = vsel %vm348_vm3, %v482_v1, %v527_v2  ;;  %v550_v12 = vsel %vm348_vm3, %v481_v63, %v528_v3 }
 0x33b   : > { %v558_v17 = vmul.f32 %v550_v12, %v925_v21  ;;  %v557_v19 = vmul.f32 %v549_v9, %v936_v28 }
 0x33c   : > { %v492_v10 = vpop.permute.xlu1 %491  ;;  %v514_v22 = vpop.permute.xlu0 %513 }
 0x33d   : > { %v493_v13 = vsel %vm286_vm4, %v490_v53, %v492_v10  ;;  %v494_v14 = vsel %vm286_vm4, %v492_v10, %v490_v53 }
 0x33e   : > { %v551_v15 = vsel %vm348_vm3, %v494_v14, %v533_v6  ;;  %v552_v16 = vsel %vm348_vm3, %v493_v13, %v534_v7 }
 0x33f   : > { %v560_v18 = vmul.f32 %v552_v16, %v930_v26  ;;  %v559_v20 = vmul.f32 %v551_v15, %v941_v29 }
 0x340   : > { %v504_v23 = vpop.permute.xlu1 %503  ;;  %v508_v29 = vpop.permute.xlu0 %507 }
 0x341   : > { %v505_v24 = vsel %vm300_vm5, %v502_v4, %v504_v23  ;;  %v506_v25 = vsel %vm300_vm5, %v504_v23, %v502_v4  ;;  %v762_v27 = vpack.c.bf16 %v560_v18, %v558_v17  ;;  %v764_v30 = vpack.c.bf16 %v559_v20, %v557_v19 }
 0x342   : > { %v539_v31 = vrot.slane %v505_v24, 4  ;;  %v540_v32 = vrot.slane %v506_v25, 4 }
 0x343   : > { %763 = vmatprep.subr.bf16.mxu1 %v762_v27 }
 0x344   : > { %765 = vmatpush1.bf16.msra.mxu1 %v764_v30  ;;  %v516_v21 = vpop.permute.xlu1 %515  ;;  %v553_v33 = vsel %vm348_vm3, %v1026_v45, %v539_v31  ;;  %v554_v34 = vsel %vm348_vm3, %v1028_v46, %v540_v32  ;;  %v520_v46 = vpop.permute.xlu0 %519 }
 0x345   : > { %v517_v26 = vsel %vm314_vm6, %v514_v22, %v516_v21  ;;  %v518_v28 = vsel %vm314_vm6, %v516_v21, %v514_v22  ;;  %v562_v44 = vmul.f32 %v554_v34, %v968_v51  ;;  %v561_v45 = vmul.f32 %v553_v33, %v987_v60 }
 0x346   : > { %v545_v35 = vrot.slane %v517_v26, 4  ;;  %v546_v36 = vrot.slane %v518_v28, 4 }
 0x348   : > { %v510_v37 = vpop.permute.xlu1 %509 }
 0x349   : > { %v511_v38 = vsel %vm307_vm7, %v508_v29, %v510_v37  ;;  %v512_v39 = vsel %vm307_vm7, %v510_v37, %v508_v29 }
 0x34a   : > { %v555_v40 = vsel %vm348_vm3, %v511_v38, %v545_v35  ;;  %v556_v41 = vsel %vm348_vm3, %v512_v39, %v546_v36 }
 0x34b   : > { %v563_v42 = vmul.f32 %v555_v40, %v977_v57  ;;  %v564_v43 = vmul.f32 %v556_v41, %v982_v58  ;;  %v567_v57 = vld [vmem:[%s1140_s4] sm:$0xf] }
 0x34c   : > { %v522_v47 = vpop.permute.xlu1 %521 }
 0x34d   : > { %v524_v48 = vsel %vm321_vm8, %v522_v47, %v520_v46  ;;  %v766_v49 = vpack.c.bf16 %v564_v43, %v562_v44  ;;  %v768_v50 = vpack.c.bf16 %v563_v42, %v561_v45  ;;  %v523_v53 = vsel %vm321_vm8, %v520_v46, %v522_v47 }
 0x34e   : > { %v566_v52 = vmul.f32 %v524_v48, %v1002_v5  ;;  %v565_v51 = vmul.f32 %v523_v53, %v1008_v11 }
 0x34f   : > { %767 = vmatprep.subr.bf16.mxu1 %v766_v49 }
 0x350   : > { %769 = vmatpush1.bf16.msra.mxu1 %v768_v50 }
 0x351   : > { %747 = vmatprep.subr.msk.mxu1 %vm348_vm3, %v566_v52 }
 0x354   : > { %748 = vmatpush1.msk.msra.mxu1 %vm348_vm3, %v565_v51 }
 0x355   : > { %749 = vmatmul.mubr.msk.f32.vlgmr.msra.gmra.mrb[0].mxu1 %vm374_vm9, %v567_v57  ;;  %v572_v58 = vpop.permute.xlu0 %571 }
 0x428   : > { %v649_v60 = vpop.f32.mrb[0].mxu1 }
 0x429   : > { %v650_v5 = vadd.f32 %v649_v60, %v572_v58  ;;  %v651_v54 = vpop.f32.mrb[1].mxu1 }
 0x42a   : > { %v652_v8 = vadd.f32 %v651_v54, %v572_v58 }
 0x42b   : > { %v654_v55 = vsel %vm348_vm3, %v650_v5, 0.0 }
 0x42c   : > { %v655_v56 = vsel %vm348_vm3, %v652_v8, 0.0 }
 0x42d   : > { %v656_v59 = vadd.f32 %v655_v56, %v654_v55 }
 0x42f   : > { %657 = vadd.xlane.f32.xlu1 %v656_v59 }
 0x4bc   : > { %v658_v11 = vpop.xlane.xlu1 %657 }
 0x4bd   : > { %v659_v61 = vmul.f32 0.00390625, %v658_v11 }
 0x4bf   : > { %v660_v62 = vsub.f32 %v650_v5, %v659_v61  ;;  %v661_v63 = vsub.f32 %v652_v8, %v659_v61 }
 0x4c1   : > { %v662_v1 = vmul.f32 %v660_v62, %v660_v62  ;;  %v663_v2 = vmul.f32 %v661_v63, %v661_v63 }
 0x4c3   : > { %v664_v3 = vsel %vm348_vm3, %v662_v1, 0.0  ;;  %v665_v4 = vsel %vm348_vm3, %v663_v2, 0.0 }
 0x4c4   : > { %v666_v6 = vadd.f32 %v665_v4, %v664_v3 }
 0x4c6   : > { %667 = vadd.xlane.f32.xlu0 %v666_v6 }
 0x553   : > { %v668_v7 = vpop.xlane.xlu0 %667 }
 0x554   : > { %v669_v9 = vmul.f32 0.00390625, %v668_v7 }
 0x556   : > { %v670_v10 = vadd.f32 1e-05, %v669_v9 }
 0x558   : > { %792 = vrsqrt.f32 %v670_v10 }
 0x562   : > { %v793_v12 = vpop.eup %792 }
 0x563   : > { %v672_v13 = vmul.f32 %v793_v12, %v660_v62  ;;  %v673_v14 = vmul.f32 %v793_v12, %v661_v63 }
 0x565   : > { %v676_v15 = vcombine.low %v672_v13, %v673_v14 }
 0x567   : > { %v678_v16 = vadd.f32 %v676_v15, %v863_v0 }
 0x569   : > { %679 = vst [vmem:[%s251_s9] sm:$0xff] %v678_v16 }
 0x56a PF: > { %s16_s21 = sadd.s32 1, %s800_s21  }
 0x56b   : > { %p13_p4 = scmp.ge.s32.totalorder %s16_s21, 4  }
 0x56d   :  { %15 = sbr.rel (!%p13_p4) target bundleno = 1 (0x1), region = 74 }

</bundles_post_ra>
